<compile_context>
chip_gen: v6e
topology: v6e:2x2x1
jax: 0.10.0
libtpu: 0.0.40
codegen_flags: <defaults>
</compile_context>

<pallas_src>
import jax
import jax.numpy as jnp
from jax import lax
from jax.experimental import pallas as pl
from jax.experimental.pallas import tpu as pltpu


def _self_attn_kernel(dq_ref, dk_ref, w_ref, o_ref, q_ref):
    # dq_ref: (1, TQ, D) bf16   rows whose attention scores we produce
    # dk_ref: (1, TK, D) bf16   rows we score against
    # w_ref : (D, D)     bf16   resident weight (constant index_map)
    # o_ref : (1, TQ, TK) f32   output tile
    # q_ref : (TQ, D)    bf16   VMEM scratch, persists across the k-tile axis

    # First GEMM only once per (batch, q-tile): Linear(d) = d @ W^T
    # -> contract last dims of both operands (no transpose materialized).
    @pl.when(pl.program_id(2) == 0)
    def _():
        q = lax.dot_general(
            dq_ref[0], w_ref[...],
            dimension_numbers=(((1,), (1,)), ((), ())),
            preferred_element_type=jnp.float32)
        q_ref[...] = q.astype(jnp.bfloat16)

    # Second GEMM: q @ d^T  -> again contract last dims of both operands.
    out = lax.dot_general(
        q_ref[...], dk_ref[0],
        dimension_numbers=(((1,), (1,)), ((), ())),
        preferred_element_type=jnp.float32)
    o_ref[0] = out.astype(o_ref.dtype)


def _pick_tile(n, candidates):
    """Largest candidate tile that divides n, else the full dimension."""
    for t in candidates:
        if n % t == 0:
            return t
    return n


def self_attention_layer(d, w, *, tq=None, tk=None):
    """d: (B, N, D) float32, w: (D, D) float32 -> (B, N, N) float32."""
    B, N, D = d.shape
    assert w.shape == (D, D)

    # Tile the two N axes of the output. 128-multiples keep sublanes/lanes
    # aligned for bf16 ((16,128) min tile); tiny N falls back to the full dim
    # (legal: block == full array dim).
    if tq is None:
        tq = _pick_tile(N, (256, 128))
    if tk is None:
        tk = _pick_tile(N, (512, 256, 128))
    assert N % tq == 0 and N % tk == 0

    # bf16 operands (MXU-native), f32 accumulation inside the kernel.
    d_bf = d.astype(jnp.bfloat16)
    w_bf = w.astype(jnp.bfloat16)

    grid = (B, N // tq, N // tk)

    return pl.pallas_call(
        _self_attn_kernel,
        out_shape=jax.ShapeDtypeStruct((B, N, N), jnp.float32),
        grid_spec=pltpu.PrefetchScalarGridSpec(
            num_scalar_prefetch=0,
            grid=grid,
            in_specs=[
                # q-side rows of d
                pl.BlockSpec((1, tq, D), lambda b, i, j: (b, i, 0)),
                # k-side rows of d (same tensor, different tiling)
                pl.BlockSpec((1, tk, D), lambda b, i, j: (b, j, 0)),
                # weight stays resident across the whole grid
                pl.BlockSpec((D, D), lambda b, i, j: (0, 0)),
            ],
            out_specs=pl.BlockSpec((1, tq, tk), lambda b, i, j: (b, i, j)),
            scratch_shapes=[pltpu.VMEM((tq, D), jnp.bfloat16)],
        ),
        compiler_params=pltpu.CompilerParams(
            # batch and q-tile axes parallel (megacore), k-tile sequential
            # because the q scratch is reused across it.
            dimension_semantics=("parallel", "parallel", "arbitrary"),
            vmem_limit_bytes=48 * 1024 * 1024,
        ),
    )(d_bf, d_bf, w_bf)


if __name__ == "__main__":
    # Small shapes consistent with the module: batch=2, seq=8, input_dim=32.
    B, N, D = 2, 8, 32
    key = jax.random.PRNGKey(0)
    kd, kw = jax.random.split(key)
    d = jax.random.normal(kd, (B, N, D), dtype=jnp.float32)
    # Deterministic weight init (stand-in for nn.Linear's kaiming uniform).
    bound = 1.0 / (D ** 0.5)
    w = jax.random.uniform(kw, (D, D), dtype=jnp.float32,
                           minval=-bound, maxval=bound)

    out = self_attention_layer(d, w)
    out = jax.block_until_ready(out)
    assert out.shape == (B, N, N)

    # Reference matching the kernel's precision recipe (bf16 operands,
    # f32 accumulation, q stored as bf16).
    d_bf = d.astype(jnp.bfloat16)
    w_bf = w.astype(jnp.bfloat16)
    q_ref = jnp.einsum("bnd,kd->bnk", d_bf, w_bf,
                       preferred_element_type=jnp.float32).astype(jnp.bfloat16)
    ref_bf16 = jnp.einsum("bnk,bmk->bnm", q_ref, d_bf,
                          preferred_element_type=jnp.float32)
    assert jnp.allclose(out, ref_bf16, atol=2e-2, rtol=2e-2)

    # Loose sanity check vs. the pure-f32 PyTorch semantics.
    ref_f32 = jnp.einsum("bnd,bmd->bnm", jnp.einsum("bnd,kd->bnk", d, w), d)
    assert jnp.allclose(out, ref_f32, atol=1e-1, rtol=1e-1)

    print("KERNEL_OK")
</pallas_src>

<mosaic_0001>
module attributes {stable_mosaic.version = 11 : i64} {
  func.func @_self_attn_kernel(%arg0: i32, %arg1: i32, %arg2: i32, %arg3: memref<1x8x32xbf16, #tpu.memory_space<vmem>>, %arg4: memref<1x8x32xbf16, #tpu.memory_space<vmem>>, %arg5: memref<32x32xbf16, #tpu.memory_space<vmem>>, %arg6: memref<1x8x8xf32, #tpu.memory_space<vmem>>, %arg7: memref<8x32xbf16, #tpu.memory_space<vmem>>) attributes {dimension_semantics = [#tpu.dimension_semantics<parallel>, #tpu.dimension_semantics<parallel>, #tpu.dimension_semantics<arbitrary>], iteration_bounds = array<i64: 2, 1, 1>, scalar_prefetch = 0 : i64, scratch_operands = 1 : i64, tpu.core_type = #tpu.core_type<tc>, window_params = [{transform_indices = @transform_0, window_bounds = array<i64: 1, 8, 32>}, {transform_indices = @transform_1, window_bounds = array<i64: 1, 8, 32>}, {pipeline_mode = #tpu.pipeline_mode<synchronous>, transform_indices = @transform_2, window_bounds = array<i64: 32, 32>}, {transform_indices = @transform_3, window_bounds = array<i64: 1, 8, 8>}]} {
    %c0_i32 = arith.constant 0 : i32
    %0 = arith.cmpi eq, %arg2, %c0_i32 : i32
    %1 = arith.extui %0 : i1 to i32
    %c0_i32_0 = arith.constant 0 : i32
    %2 = arith.cmpi ne, %1, %c0_i32_0 : i32
    scf.if %2 {
      %c0_8 = arith.constant 0 : index
      %c0_9 = arith.constant 0 : index
      %c0_10 = arith.constant 0 : index
      %10 = vector.load %arg3[%c0_8, %c0_9, %c0_10] : memref<1x8x32xbf16, #tpu.memory_space<vmem>>, vector<1x8x32xbf16>
      %11 = vector.shape_cast %10 : vector<1x8x32xbf16> to vector<8x32xbf16>
      %c0_11 = arith.constant 0 : index
      %c0_12 = arith.constant 0 : index
      %12 = vector.load %arg5[%c0_11, %c0_12] : memref<32x32xbf16, #tpu.memory_space<vmem>>, vector<32x32xbf16>
      %cst_13 = arith.constant dense<0.000000e+00> : vector<8x32xf32>
      %13 = tpu.matmul %11, %12, %cst_13 {dimension_numbers = #tpu.dot_dimension_numbers<[1], [1], [0], [0], [0, 0, 1, 0], [], []>} : vector<8x32xbf16>, vector<32x32xbf16>, vector<8x32xf32> -> vector<8x32xf32>
      %14 = arith.truncf %13 : vector<8x32xf32> to vector<8x32xbf16>
      %c0_14 = arith.constant 0 : index
      %c0_15 = arith.constant 0 : index
      %15 = vector.load %arg7[%c0_14, %c0_15] : memref<8x32xbf16, #tpu.memory_space<vmem>>, vector<8x32xbf16>
      tpu.vector_store %arg7[%c0_14, %c0_15], %14 {strides = array<i32>} : memref<8x32xbf16, #tpu.memory_space<vmem>>, vector<8x32xbf16>,
    } else {
    }
    %c0 = arith.constant 0 : index
    %c0_1 = arith.constant 0 : index
    %3 = vector.load %arg7[%c0, %c0_1] : memref<8x32xbf16, #tpu.memory_space<vmem>>, vector<8x32xbf16>
    %c0_2 = arith.constant 0 : index
    %c0_3 = arith.constant 0 : index
    %c0_4 = arith.constant 0 : index
    %4 = vector.load %arg4[%c0_2, %c0_3, %c0_4] : memref<1x8x32xbf16, #tpu.memory_space<vmem>>, vector<1x8x32xbf16>
    %5 = vector.shape_cast %4 : vector<1x8x32xbf16> to vector<8x32xbf16>
    %cst = arith.constant dense<0.000000e+00> : vector<8x8xf32>
    %6 = tpu.matmul %3, %5, %cst {dimension_numbers = #tpu.dot_dimension_numbers<[1], [1], [0], [0], [0, 0, 1, 0], [], []>} : vector<8x32xbf16>, vector<8x32xbf16>, vector<8x8xf32> -> vector<8x8xf32>
    %c0_5 = arith.constant 0 : index
    %c0_6 = arith.constant 0 : index
    %c0_7 = arith.constant 0 : index
    %7 = vector.load %arg6[%c0_5, %c0_6, %c0_7] : memref<1x8x8xf32, #tpu.memory_space<vmem>>, vector<1x8x8xf32>
    %8 = vector.shape_cast %7 : vector<1x8x8xf32> to vector<8x8xf32>
    %9 = vector.shape_cast %6 : vector<8x8xf32> to vector<1x8x8xf32>
    tpu.vector_store %arg6[%c0_5, %c0_6, %c0_7], %9 {strides = array<i32>} : memref<1x8x8xf32, #tpu.memory_space<vmem>>, vector<1x8x8xf32>,
    return
  }
  func.func @transform_0(%arg0: i32, %arg1: i32, %arg2: i32) -> (i32, i32, i32) {
    %c0_i32 = arith.constant 0 : i32
    %c0_i32_0 = arith.constant 0 : i32
    return %arg0, %arg1, %c0_i32 : i32, i32, i32
  }
  func.func @transform_1(%arg0: i32, %arg1: i32, %arg2: i32) -> (i32, i32, i32) {
    %c0_i32 = arith.constant 0 : i32
    %c0_i32_0 = arith.constant 0 : i32
    return %arg0, %arg2, %c0_i32 : i32, i32, i32
  }
  func.func @transform_2(%arg0: i32, %arg1: i32, %arg2: i32) -> (i32, i32) {
    %c0_i32 = arith.constant 0 : i32
    %c0_i32_0 = arith.constant 0 : i32
    %c0_i32_1 = arith.constant 0 : i32
    return %c0_i32, %c0_i32_0 : i32, i32
  }
  func.func @transform_3(%arg0: i32, %arg1: i32, %arg2: i32) -> (i32, i32, i32) {
    %c0_i32 = arith.constant 0 : i32
    return %arg0, %arg1, %arg2 : i32, i32, i32
  }
}

</mosaic_0001>

<bundles_post_ra>
// kernel: tpu_custom_call.1
= control target key start
LH: loop header
LB: loop body
LE: loop exit
PB: predicated region body
PF: predicated region fallthrough
CT: control target
= control target key end

     0   :  { %s1049_s0 = inlined_call_operand.hbm [shape: bf16[2,8,32], index: 0, kind: input, shape index: {}]   ;;  %s1050_s1 = inlined_call_operand.hbm [shape: bf16[2,8,32], index: 1, kind: input, shape index: {}]   ;;  %s1051_s2 = inlined_call_operand.hbm [shape: bf16[32,32], index: 2, kind: input, shape index: {}]   ;;  %s1052_s3 = inlined_call_operand.hbm [shape: f32[2,8,8], index: 3, kind: output, shape index: {}]  }
   0x1   :  { %1053 = sst [smem:[#allocation14_spill]] %s1051_s2 }
   0x2   :  { %8 = vsyncpa [#allocation4], 0 }
   0x3   :  { %10 = vsyncpa [#allocation4 + $0x1], 0 }
   0x4   :  { %11 = vsyncpa [#allocation7], 0 }
   0x5   :  { %13 = vsyncpa [#allocation7 + $0x1], 0 }
   0x6   :  { %14 = vsyncpa [#allocation5], 0 }
   0x7   :  { %16 = vsyncpa [#allocation5 + $0x1], 0  ;;  %s848_s12 = smov 0   ;;  %s850_s13 = smov 0  }
   0x8   :  { %s852_s14 = smov 0   ;;  %s854_s15 = smov 0  }
   0x9   :  { %s856_s16 = smov 0   ;;  %s858_s17 = smov 0  }
   0xa LB: > { %s879_s18 = sadd.s32 4294967295, %s818_s17   ;;  %s524_s19 = sadd.s32 4294967294, %s818_s17   ;;  %s818_s17 = sphi %s858_s17, %s22_s17   ;;  %s814_s16 = sphi %s856_s16, %s1069_s16   ;;  %s810_s15 = sphi %s854_s15, %s1068_s15   ;;  %s806_s14 = sphi %s852_s14, %s1067_s14   ;;  %s802_s13 = sphi %s850_s13, %s1066_s13   ;;  %s798_s12 = sphi %s848_s12, %s1065_s12  }
   0xb   : > { %p63_p0 = scmp.ne.s32.totalorder %s802_s13, %s798_s12  ;;  %p64_p1 = scmp.eq.s32.totalorder %s879_s18, 0 }
   0xc   : > { %p146_p3 = scmp.eq.s32.totalorder %s524_s19, 1  ;;  %p525_p5 = scmp.ge.s32.totalorder %s818_s17, 1 }
   0xd   : > { %p888_p4 = por %p64_p1, %p63_p0  ;;  %p153_p7 = scmp.lt.s32.totalorder %s818_s17, 3 }
   0xe   : > { %p893_p6 = por %p146_p3, %p63_p0  ;;  %s820_s23 = smov [#allocation8]  }
   0xf   : > { %p898_p8 = pnand %p525_p5, %p153_p7  ;;  %s165_s24 = sshll.u32 %s820_s23, 4  ;;  %s166_s24 = int_to_ptr.vmem [resolvable:$true] %s165_s24 }
  0x10   : > { %s1055_s21 = scalar_select %p893_p6, 1, 0 }
  0x11   : > { %p574_p9 = pneg %p898_p8  ;;  %s41_s26 = sadd.s32 1, %s814_s16 }
  0x12   : > { %s659_s27 = scalar_lea.vmem %s166_s24, 256  ;;  %p667_p5 = scmp.lt.s32.totalorder %s166_s24, %s166_s24 }
  0x13   : > { %p907_p11 = pnand %p574_p9, %p64_p1  ;;  %p660_p13 = scmp.ne.s32.totalorder %s166_s24, %s659_s27 }
  0x14   : > { %p668_p7 = scmp.lt.s32.totalorder %s659_s27, %s659_s27 }
  0x15   : > { %p650_p12 = pneg %p907_p11 }
  0x16   : > { %p669_p2 = por %p668_p7, %p667_p5 }
  0x17   : > { %p662_p0 = pnand %p660_p13, %p650_p12 }
  0x19   : > { %p663_p3 = pneg %p662_p0 }
  0x1b   : > { %p670_p6 = pnand %p669_p2, %p663_p3 }
  0x1d   : > { %673 = shalt.err (!%p670_p6)
}
  0x1e   : > { %s821_s28 = smov 64   ;;  %s822_s29 = smov 4  }
  0x1f   : > { %s1058_s2 = sld [smem:[#allocation14_spill]]  ;;  %p43_p2 = scmp.ge.s32.totalorder %s41_s26, 2 }
  0x20   : > { %s50_s5 = sadd.s32 1, %s806_s14  ;;  %p57_p6 = scmp.ne.s32.totalorder %s806_s14, %s802_s13 }
  0x21   : > { %p58_p9 = scmp.eq.s32.totalorder %s818_s17, 0  ;;  %s1071_s26 = smov (%p43_p2, %s41_s26), 0 }
  0x22   : > { %p1060_p13 = scmp.eq.s32.totalorder %s879_s18, 1  ;;  %s45_s8 = ssub.s32 %s814_s16, %s1071_s26 }
  0x23   : > { %p925_p12 = por %p58_p9, %p57_p6  ;;  %p48_p3 = scmp.eq.s32.totalorder %s45_s8, 0 }
  0x24   : > { %p931_p0 = por %p1060_p13, %p57_p6  ;;  %s179_s9 = sand.u32 1, %s806_s14  }
  0x25   : > { %577 = dma.hbm_to_vmem [thread:$0]  (!%p907_p11), %s1058_s2, 256, %s166_s24, [#allocation7], %s821_s28, %s821_s28, %s822_s29  }
  0x26   : > { %p590_p11 = scmp.lt.s32.totalorder %s818_s17, 2  ;;  %s528_s10 = sshll.u32 %s179_s9, 2 }
  0x27   : > { %s940_s11 = scalar_select %p48_p3, %s806_s14, %s50_s5  }
  0x28   : > { %s529_s19 = sshll.u32 %s814_s16, 6  ;;  %s183_s27 = scalar_lea.vmem [#allocation3], %s528_s10 }
  0x29   : > { %s189_s25 = scalar_lea.hbm %s1049_s0, %s529_s19  ;;  %s191_s28 = sshll.u32 %s183_s27, 4  ;;  %s192_s28 = int_to_ptr.vmem [resolvable:$true] %s191_s28 }
  0x2a   : > { %p948_p5 = pnand %p590_p11, %p925_p12  ;;  %s955_s5 = scalar_lea.hbm %s1050_s1, %s529_s19 }
  0x2b   : > { %s198_s8 = sand.u32 1, %s818_s17   ;;  %s180_s2 = scalar_lea.sflag [#allocation4], %s179_s9 }
  0x2c   : > { %p676_p7 = pneg %p948_p5  ;;  %s687_s23 = scalar_lea.vmem %s192_s28, 64 }
  0x2d   : > { %p688_p2 = scmp.ne.s32.totalorder %s192_s28, %s687_s23  ;;  %s823_s6 = smov [#allocation3]  }
  0x2e   : > { %s692_s24 = sshll.u32 %s823_s6, 4  ;;  %s693_s24 = int_to_ptr.vmem [resolvable:$false] %s692_s24 }
  0x2f   : > { %p690_p6 = pnand %p688_p2, %p676_p7  ;;  %s694_s27 = scalar_lea.vmem %s693_s24, 128 }
  0x30   : > { %p695_p12 = scmp.lt.s32.totalorder %s192_s28, %s693_s24  ;;  %p696_p13 = scmp.lt.s32.totalorder %s694_s27, %s687_s23 }
  0x31   : > { %p691_p9 = pneg %p690_p6 }
  0x32   : > { %p697_p11 = por %p696_p13, %p695_p12 }
  0x34   : > { %p698_p3 = pnand %p697_p11, %p691_p9 }
  0x36   : > { %701 = shalt.err (!%p698_p3)
}
  0x37   : > { %581 = dma.hbm_to_vmem [thread:$0]  (!%p948_p5), %s189_s25, 64, %s192_s28, %s180_s2  }
  0x38   : > { %s202_s9 = scalar_lea.vmem [#allocation6], %s528_s10  ;;  %s199_s30 = scalar_lea.sflag [#allocation7], %s198_s8 }
  0x39   : > { %s210_s19 = sshll.u32 %s202_s9, 4  ;;  %s824_s6 = smov [#allocation6]   ;;  %s211_s19 = int_to_ptr.vmem [resolvable:$true] %s210_s19 }
  0x3a   : > { %s715_s4 = scalar_lea.vmem %s211_s19, 64  ;;  %s720_s24 = sshll.u32 %s824_s6, 4  ;;  %s721_s24 = int_to_ptr.vmem [resolvable:$false] %s720_s24 }
  0x3b   : > { %p716_p2 = scmp.ne.s32.totalorder %s211_s19, %s715_s4  ;;  %s722_s23 = scalar_lea.vmem %s721_s24, 128 }
  0x3c   : > { %p723_p9 = scmp.lt.s32.totalorder %s211_s19, %s721_s24  ;;  %p724_p12 = scmp.lt.s32.totalorder %s722_s23, %s715_s4 }
  0x3d   : > { %p718_p6 = pnand %p716_p2, %p676_p7 }
  0x3e   : > { %p725_p13 = por %p724_p12, %p723_p9 }
  0x3f   : > { %p719_p10 = pneg %p718_p6 }
  0x41   : > { %p726_p11 = pnand %p725_p13, %p719_p10 }
  0x43   : > { %729 = shalt.err (!%p726_p11)
}
  0x44   : > { %584 = dma.hbm_to_vmem [thread:$0]  (!%p948_p5), %s955_s5, 64, %s211_s19, %s199_s30  }
  0x45   : > { %219 = sbr.rel (%p898_p8) target bundleno = 510 (0x1fe), region = 32  ;;  %s974_s2 = sand.u32 (!%p898_p8), 1, %s802_s13  }
  0x46   : > { %s533_s10 = sshll.u32 (!%p898_p8), %s974_s2, 2  ;;  %s222_s25 = scalar_lea.sflag (!%p898_p8), [#allocation4], %s974_s2 }
  0x47   : > { %s225_s28 = scalar_lea.vmem (!%p898_p8), [#allocation3], %s533_s10 }
  0x4a   : > { %781 = dma.done.wait (%p888_p4), %s222_s25, 64  }
  0x4b   : > { %783 = vsyncadd (%p888_p4), %s222_s25, 4294967232  ;;  %s230_s29 = sand.u32 1, %s879_s18   ;;  %s234_s22 = scalar_lea.vmem [#allocation6], %s533_s10 }
  0x4c   : > { %s231_s5 = scalar_lea.sflag [#allocation7], %s230_s29 }
  0x4d   : > { %785 = dma.done.wait (%p888_p4), %s231_s5, 64  }
  0x4e   : > { %787 = vsyncadd (%p888_p4), %s231_s5, 4294967232 }
  0x4f   : > { %789 = dma.done.wait (%p64_p1), [#allocation7], 256  }
  0x50   : > { %791 = vsyncadd (%p64_p1), [#allocation7], 4294967040  ;;  %v825_v0 = vmov 0.0   ;;  %vm826_vm0 = vmmov 0   ;;  %vm286_vm1 = vcmask 261120   ;;  %v646_v1 = vld [vmem:[#allocation8 + $0x8] sm:$0xff]  }
  0x51   : > { %550 = vmatprep.subr.bf16.mxu0 %v825_v0  ;;  %554 = vmatprep.mubr.msk.bf16.mxu0 %vm826_vm0, %v825_v0  ;;  %v294_v2 = vsel %vm286_vm1, %v646_v1, 0  ;;  %v647_v3 = vld [vmem:[#allocation8] sm:$0xff]   ;;  %v271_v5 = vld [vmem:[%s225_s28] sm:$0xf]  ;;  %v340_v6 = vld [vmem:[%s234_s22] sm:$0xf] }
  0x52   : > { %558 = vmatprep.subr.bf16.mxu1 %v825_v0  ;;  %560 = vmatprep.mubr.msk.bf16.mxu1 %vm826_vm0, %v825_v0  ;;  %v291_v4 = vsel %vm286_vm1, %v647_v3, 0  ;;  %v346_v7 = vsel %vm286_vm1, %v340_v6, 0  ;;  %vm337_vm2 = vcmask 257024   ;;  %s536_s18 = sshll.u32 %s974_s2, 3  ;;  %s542_s20 = sshll.u32 %s810_s15, 7  ;;  %vm388_vm3 = vcmask 64512  }
  0x53   : > { %551 = vmatpush3.bf16.xpose.msra.mxu0 %v294_v2  ;;  %559 = vmatpush3.bf16.xpose.msra.mxu1 %v346_v7  ;;  %s265_s8 = scalar_lea.vmem [#allocation9], %s536_s18  ;;  %s1001_s30 = scalar_lea.hbm %s1052_s3, %s542_s20 }
  0x54   : > { %552 = vmatprep.subr.bf16.mxu0 %v825_v0  ;;  %s406_s27 = sshll.u32 %s265_s8, 4  ;;  %s391_s4 = scalar_lea.sflag [#allocation5], %s974_s2  ;;  %s1003_s27 = int_to_ptr.vmem [resolvable:$true] %s406_s27 }
  0x55   : > { %s730_s6 = scalar_lea.vmem %s1003_s27, 128  ;;  %s827_s15 = smov [#allocation9]  }
  0x56   : > { %p731_p1 = scmp.ne.s32.totalorder %s1003_s27, %s730_s6  ;;  %s734_s24 = sshll.u32 %s827_s15, 4  ;;  %s735_s24 = int_to_ptr.vmem [resolvable:$false] %s734_s24 }
  0x57   : > { %s736_s23 = scalar_lea.vmem %s735_s24, 256  ;;  %p737_p10 = scmp.lt.s32.totalorder %s1003_s27, %s735_s24 }
  0x58   : > { %p732_p4 = pnand %p731_p1, %p931_p0  ;;  %p738_p5 = scmp.lt.s32.totalorder %s736_s23, %s730_s6 }
  0x5a   : > { %p733_p8 = pneg %p732_p4  ;;  %p739_p7 = por %p738_p5, %p737_p10 }
  0x5b   : > { %553 = vmatpush3.bf16.xpose.msra.mxu0 %v291_v4 }
  0x5c   : > { %p740_p3 = pnand %p739_p7, %p733_p8 }
  0x62   : > { %555 = vmatmul.mubr.msk.bf16.vlgmr.msra.gmra.mxu0 %vm286_vm1, %v271_v5 }
 0x122   : > { %v330_v8 = vpop.f32.mrf.mxu0 }
 0x123   : > { %v336_v9 = vpack.c.bf16 %v330_v8, %v330_v8 }
 0x124   : > { %v556_v10 = vpop.f32.mrf.mxu0 }
 0x125   : > { %338 = vst.msk [vmem:[#allocation2] sm:$0xf] %vm337_vm2, %v336_v9 }
 0x126   : > { %v333_v11 = vpop.f32.mrf.mxu0 }
 0x128   : > { %v557_v12 = vpop.f32.mrf.mxu0 }
 0x12c   : > { %v339_v13 = vld [vmem:[#allocation2] sm:$0xf] }
 0x12d   : > { %561 = vmatmul.mubr.msk.bf16.vlgmr.msra.gmra.mxu1 %vm286_vm1, %v339_v13 }
 0x1ed   : > { %v382_v14 = vpop.f32.mrf.mxu1 }
 0x1ee   : > { %389 = vst.msk [vmem:[%s265_s8] sm:$0xff] %vm388_vm3, %v382_v14 }
 0x1ef   : > { %v562_v15 = vpop.f32.mrf.mxu1 }
 0x1f0   : > { %743 = shalt.err (!%p740_p3)
}
 0x1f1   : > { %s744_s10 = scalar_lea.hbm %s1001_s30, 128  ;;  %s748_s28 = scalar_lea.hbm %s1052_s3, 256 }
 0x1f2   : > { %p745_p2 = scmp.ne.s32.totalorder %s1001_s30, %s744_s10  ;;  %p749_p12 = scmp.lt.s32.totalorder %s1001_s30, %s1052_s3 }
 0x1f3   : > { %p750_p13 = scmp.lt.s32.totalorder %s748_s28, %s744_s10 }
 0x1f4   : > { %p746_p6 = pnand %p745_p2, %p931_p0 }
 0x1f5   : > { %p751_p11 = por %p750_p13, %p749_p12 }
 0x1f6   : > { %p747_p9 = pneg %p746_p6 }
 0x1f8   : > { %p752_p1 = pnand %p751_p11, %p747_p9 }
 0x1fa   : > { %755 = shalt.err (!%p752_p1)
}
 0x1fb   : > { %572 = dma.vmem_to_hbm [thread:$0]  (%p931_p0), %s1003_s27, 128, %s1001_s30, %s391_s4   ;;  %v385_v16 = vpop.f32.mrf.mxu1 }
 0x1fd   : > { %v563_v17 = vpop.f32.mrf.mxu1 }
 0x1fe PF: > { %s418_s22 = sand.u32 1, %s798_s12   ;;  %p1063_p4 = scmp.ne.s32.totalorder %s1055_s21, 0 }
 0x1ff   : > { %p1064_p8 = scmp.ge.s32.totalorder %s818_s17, 2  ;;  %s419_s18 = scalar_lea.sflag [#allocation5], %s418_s22 }
 0x201   : > { %p586_p10 = pnand %p1064_p8, %p1063_p4 }
 0x203   : > { %p587_p5 = pneg %p586_p10 }
 0x205   : > { %793 = dma.done.wait (%p587_p5), %s419_s18, 128  }
 0x206   : > { %795 = vsyncadd (%p587_p5), %s419_s18, 4294967168  ;;  %s22_s17 = sadd.s32 1, %s818_s17   ;;  %s1065_s12 = smov %s802_s13 }
 0x207   : > { %p19_p7 = scmp.ge.s32.totalorder %s22_s17, 4   ;;  %s1066_s13 = smov %s806_s14 }
 0x208   : > { %s1067_s14 = smov %s940_s11  ;;  %s1068_s15 = smov %s814_s16 }
 0x209   : > { %s1069_s16 = smov %s1071_s26  ;;  %21 = sbr.rel (!%p19_p7) target bundleno = 10 (0xa), region = 98 }
 0x20e   :  { %424 = vsyncpa [#allocation4], 1 }
 0x20f   :  { %426 = vsyncpa [#allocation4 + $0x1], 1 }
 0x210   :  { %427 = vsyncpa [#allocation7], 1 }
 0x211   :  { %429 = vsyncpa [#allocation7 + $0x1], 1 }
 0x212   :  { %430 = vsyncpa [#allocation5], 1 }
 0x213   :  { %432 = vsyncpa [#allocation5 + $0x1], 1 }

</bundles_post_ra>
